<compile_context>
chip_gen: v7x
topology: tpu7x:2x2x1
jax: 0.10.0
libtpu: 0.0.40
codegen_flags: <defaults>
</compile_context>

<pallas_src>
import functools

import jax
import jax.numpy as jnp
from jax.experimental import pallas as pl
from jax.experimental.pallas import tpu as pltpu


def _round_up(n, m):
    return ((n + m - 1) // m) * m


def mlp_kernel(x_ref, w1_ref, b1_ref, w2_ref, b2_ref, o_ref):
    # fc1: (TB, D) @ (D, H) -> f32 accumulate on the MXU.
    h = jnp.dot(x_ref[...], w1_ref[...], preferred_element_type=jnp.float32)
    # Bias add + ReLU in f32 on the VPU (biases are kept f32 regardless of the
    # weight dtype; avoids bf16 elementwise emulation on v5e).
    h = h + b1_ref[...]
    h = jnp.maximum(h, 0.0)
    # fc2: downcast activations to the weight dtype for the MXU, accumulate f32.
    out = jnp.dot(h.astype(w2_ref.dtype), w2_ref[...],
                  preferred_element_type=jnp.float32)
    out = out + b2_ref[...]
    o_ref[...] = out.astype(o_ref.dtype)


@functools.partial(jax.jit,
                   static_argnames=("block_b", "weights_dtype", "out_dtype"))
def architecture1_forward(x, w1, b1, w2, b2, *, block_b=128,
                          weights_dtype=None, out_dtype=None):
    """Fused fc1 -> ReLU -> fc2.

    x : (B, D_in)          activations
    w1: (D_in, H)          fc1 weight, stored (in_features, out_features)
    b1: (H,) or (1, H)     fc1 bias
    w2: (H, C)             fc2 weight, stored (in_features, out_features)
    b2: (C,) or (1, C)     fc2 bias
    """
    B, D = x.shape
    H = w1.shape[1]
    C = w2.shape[1]
    out_dtype = out_dtype or x.dtype

    # Lane-dense padding: last dims to multiples of 128, batch to the tile size.
    D_p = _round_up(D, 128)
    H_p = _round_up(H, 128)
    C_p = _round_up(C, 128)
    block_b = _round_up(max(8, min(block_b, _round_up(B, 8))), 8)
    B_p = _round_up(B, block_b)

    # Zero padding keeps the math exact: padded x cols hit zero w1 rows,
    # padded hidden cols are ReLU(0)=0 and hit zero w2 rows, padded output
    # cols are sliced off below.
    x_p = jnp.zeros((B_p, D_p), x.dtype).at[:B, :D].set(x)
    w1_p = jnp.zeros((D_p, H_p), w1.dtype).at[:D, :H].set(w1)
    w2_p = jnp.zeros((H_p, C_p), w2.dtype).at[:H, :C].set(w2)
    b1_p = jnp.zeros((1, H_p), jnp.float32).at[:, :H].set(
        b1.reshape(1, H).astype(jnp.float32))
    b2_p = jnp.zeros((1, C_p), jnp.float32).at[:, :C].set(
        b2.reshape(1, C).astype(jnp.float32))

    if weights_dtype is not None:
        # bf16 weights + activations into the MXU, f32 accumulation / bias / ReLU.
        w1_p = w1_p.astype(weights_dtype)
        w2_p = w2_p.astype(weights_dtype)
        x_p = x_p.astype(weights_dtype)

    grid = (B_p // block_b,)

    out_p = pl.pallas_call(
        mlp_kernel,
        out_shape=jax.ShapeDtypeStruct((B_p, C_p), out_dtype),
        grid=grid,
        in_specs=[
            # Activations: one batch tile per grid step.
            pl.BlockSpec((block_b, D_p), lambda i: (i, 0)),
            # Weights/biases: same block every step -> VMEM-resident, no re-DMA.
            pl.BlockSpec((D_p, H_p), lambda i: (0, 0)),
            pl.BlockSpec((1, H_p), lambda i: (0, 0)),
            pl.BlockSpec((H_p, C_p), lambda i: (0, 0)),
            pl.BlockSpec((1, C_p), lambda i: (0, 0)),
        ],
        out_specs=pl.BlockSpec((block_b, C_p), lambda i: (i, 0)),
        compiler_params=pltpu.CompilerParams(
            # Batch tiles are independent -> shard across v7x's 2 TensorCores.
            dimension_semantics=("parallel",),
        ),
    )(x_p, w1_p, b1_p, w2_p, b2_p)

    return out_p[:B, :C]


if __name__ == "__main__":
    # Shapes implied by nn.Linear(input_size, hidden_size) / nn.Linear(hidden_size, num_classes).
    batch = 256          # enough rows to exercise the batch grid (2 tiles of 128)
    input_size = 64
    hidden_size = 128
    num_classes = 32

    key = jax.random.PRNGKey(0)
    kx, kw1, kb1, kw2, kb2 = jax.random.split(key, 5)

    x = jax.random.normal(kx, (batch, input_size), dtype=jnp.float32)

    # Deterministic param init (uniform, torch-Linear-like fan_in scaling),
    # stored as (in_features, out_features) = transpose of torch's (out, in).
    lim1 = 1.0 / (input_size ** 0.5)
    w1 = jax.random.uniform(kw1, (input_size, hidden_size),
                            minval=-lim1, maxval=lim1, dtype=jnp.float32)
    b1 = jax.random.uniform(kb1, (1, hidden_size),
                            minval=-lim1, maxval=lim1, dtype=jnp.float32)

    lim2 = 1.0 / (hidden_size ** 0.5)
    w2 = jax.random.uniform(kw2, (hidden_size, num_classes),
                            minval=-lim2, maxval=lim2, dtype=jnp.float32)
    b2 = jax.random.uniform(kb2, (1, num_classes),
                            minval=-lim2, maxval=lim2, dtype=jnp.float32)

    # Pure-JAX reference (same math as torch fc1 -> relu -> fc2).
    ref = jnp.maximum(x @ w1 + b1, 0.0) @ w2 + b2

    # 1) f32 weights: exact-ish match.
    out_f32 = architecture1_forward(x, w1, b1, w2, b2, block_b=128)
    out_f32 = jax.block_until_ready(out_f32)
    assert out_f32.shape == (batch, num_classes)
    assert jnp.allclose(out_f32, ref, atol=1e-5, rtol=1e-5)

    # 2) bf16 weights/activations, f32 accumulation (v6e/v7x fast path): loose match.
    out_bf16 = architecture1_forward(x, w1, b1, w2, b2, block_b=128,
                                     weights_dtype=jnp.bfloat16,
                                     out_dtype=jnp.float32)
    out_bf16 = jax.block_until_ready(out_bf16)
    assert out_bf16.shape == (batch, num_classes)
    assert jnp.allclose(out_bf16, ref, atol=5e-2, rtol=5e-2)

    print("KERNEL_OK")
</pallas_src>

<mosaic_0001>
module attributes {stable_mosaic.version = 11 : i64} {
  func.func @mlp_kernel(%arg0: i32, %arg1: memref<128x128xf32, #tpu.memory_space<vmem>>, %arg2: memref<128x128xf32, #tpu.memory_space<vmem>>, %arg3: memref<1x128xf32, #tpu.memory_space<vmem>>, %arg4: memref<128x128xf32, #tpu.memory_space<vmem>>, %arg5: memref<1x128xf32, #tpu.memory_space<vmem>>, %arg6: memref<128x128xf32, #tpu.memory_space<vmem>>) attributes {dimension_semantics = [#tpu.dimension_semantics<parallel>], iteration_bounds = array<i64: 2>, scalar_prefetch = 0 : i64, scratch_operands = 0 : i64, tpu.core_type = #tpu.core_type<tc>, window_params = [{transform_indices = @transform_0, window_bounds = array<i64: 128, 128>}, {pipeline_mode = #tpu.pipeline_mode<synchronous>, transform_indices = @transform_1, window_bounds = array<i64: 128, 128>}, {pipeline_mode = #tpu.pipeline_mode<synchronous>, transform_indices = @transform_2, window_bounds = array<i64: 1, 128>}, {pipeline_mode = #tpu.pipeline_mode<synchronous>, transform_indices = @transform_3, window_bounds = array<i64: 128, 128>}, {pipeline_mode = #tpu.pipeline_mode<synchronous>, transform_indices = @transform_4, window_bounds = array<i64: 1, 128>}, {transform_indices = @transform_5, window_bounds = array<i64: 128, 128>}]} {
    %c0 = arith.constant 0 : index
    %c0_0 = arith.constant 0 : index
    %0 = vector.load %arg1[%c0, %c0_0] : memref<128x128xf32, #tpu.memory_space<vmem>>, vector<128x128xf32>
    %c0_1 = arith.constant 0 : index
    %c0_2 = arith.constant 0 : index
    %1 = vector.load %arg2[%c0_1, %c0_2] : memref<128x128xf32, #tpu.memory_space<vmem>>, vector<128x128xf32>
    %cst = arith.constant dense<0.000000e+00> : vector<128x128xf32>
    %2 = tpu.matmul %0, %1, %cst {dimension_numbers = #tpu.dot_dimension_numbers<[1], [0], [0], [1], [0, 0, 1, 1], [], []>} : vector<128x128xf32>, vector<128x128xf32>, vector<128x128xf32> -> vector<128x128xf32>
    %c0_3 = arith.constant 0 : index
    %c0_4 = arith.constant 0 : index
    %3 = vector.load %arg3[%c0_3, %c0_4] : memref<1x128xf32, #tpu.memory_space<vmem>>, vector<1x128xf32>
    %4 = vector.broadcast %3 : vector<1x128xf32> to vector<128x128xf32>
    %5 = arith.addf %2, %4 : vector<128x128xf32>
    %cst_5 = arith.constant 0.000000e+00 : f32
    %6 = vector.broadcast %cst_5 : f32 to vector<128x128xf32>
    %7 = arith.maximumf %5, %6 : vector<128x128xf32>
    %c0_6 = arith.constant 0 : index
    %c0_7 = arith.constant 0 : index
    %8 = vector.load %arg4[%c0_6, %c0_7] : memref<128x128xf32, #tpu.memory_space<vmem>>, vector<128x128xf32>
    %cst_8 = arith.constant dense<0.000000e+00> : vector<128x128xf32>
    %9 = tpu.matmul %7, %8, %cst_8 {dimension_numbers = #tpu.dot_dimension_numbers<[1], [0], [0], [1], [0, 0, 1, 1], [], []>} : vector<128x128xf32>, vector<128x128xf32>, vector<128x128xf32> -> vector<128x128xf32>
    %c0_9 = arith.constant 0 : index
    %c0_10 = arith.constant 0 : index
    %10 = vector.load %arg5[%c0_9, %c0_10] : memref<1x128xf32, #tpu.memory_space<vmem>>, vector<1x128xf32>
    %11 = vector.broadcast %10 : vector<1x128xf32> to vector<128x128xf32>
    %12 = arith.addf %9, %11 : vector<128x128xf32>
    %c0_11 = arith.constant 0 : index
    %c0_12 = arith.constant 0 : index
    %13 = vector.load %arg6[%c0_11, %c0_12] : memref<128x128xf32, #tpu.memory_space<vmem>>, vector<128x128xf32>
    tpu.vector_store %arg6[%c0_11, %c0_12], %12 {strides = array<i32>} : memref<128x128xf32, #tpu.memory_space<vmem>>, vector<128x128xf32>,
    return
  }
  func.func @transform_0(%arg0: i32) -> (i32, i32) {
    %c0_i32 = arith.constant 0 : i32
    %c0_i32_0 = arith.constant 0 : i32
    return %arg0, %c0_i32 : i32, i32
  }
  func.func @transform_1(%arg0: i32) -> (i32, i32) {
    %c0_i32 = arith.constant 0 : i32
    %c0_i32_0 = arith.constant 0 : i32
    %c0_i32_1 = arith.constant 0 : i32
    return %c0_i32, %c0_i32_0 : i32, i32
  }
  func.func @transform_2(%arg0: i32) -> (i32, i32) {
    %c0_i32 = arith.constant 0 : i32
    %c0_i32_0 = arith.constant 0 : i32
    %c0_i32_1 = arith.constant 0 : i32
    return %c0_i32, %c0_i32_0 : i32, i32
  }
  func.func @transform_3(%arg0: i32) -> (i32, i32) {
    %c0_i32 = arith.constant 0 : i32
    %c0_i32_0 = arith.constant 0 : i32
    %c0_i32_1 = arith.constant 0 : i32
    return %c0_i32, %c0_i32_0 : i32, i32
  }
  func.func @transform_4(%arg0: i32) -> (i32, i32) {
    %c0_i32 = arith.constant 0 : i32
    %c0_i32_0 = arith.constant 0 : i32
    %c0_i32_1 = arith.constant 0 : i32
    return %c0_i32, %c0_i32_0 : i32, i32
  }
  func.func @transform_5(%arg0: i32) -> (i32, i32) {
    %c0_i32 = arith.constant 0 : i32
    %c0_i32_0 = arith.constant 0 : i32
    return %arg0, %c0_i32 : i32, i32
  }
}

</mosaic_0001>

<bundles_post_ra>
// kernel: architecture1_forward.1
= control target key start
LH: loop header
LB: loop body
LE: loop exit
PB: predicated region body
PF: predicated region fallthrough
CT: control target
= control target key end

     0   :  { %s967_s18 = smov 0   ;;  %s1129_s0 = inlined_call_operand.vmem [shape: f32[256,128], index: 0, kind: input, shape index: {}]   ;;  %s1130_s1 = inlined_call_operand.vmem [shape: f32[128,128], index: 1, kind: input, shape index: {}]   ;;  %s1131_s2 = inlined_call_operand.vmem [shape: f32[1,128], index: 2, kind: input, shape index: {}]   ;;  %s1132_s3 = inlined_call_operand.vmem [shape: f32[128,128], index: 3, kind: input, shape index: {}]   ;;  %s1133_s4 = inlined_call_operand.vmem [shape: f32[1,128], index: 4, kind: input, shape index: {}]   ;;  %s1134_s5 = inlined_call_operand.vmem [shape: f32[256,128], index: 5, kind: output, shape index: {}]  }
   0x1 LB: > { %s668_s19 = sadd.s32 4294967295, %s935_s18   ;;  %p672_p0 = scmp.ge.s32.totalorder %s935_s18, 1  ;;  %s935_s18 = sphi %s967_s18, %s15_s18  }
   0x2   : > { %p188_p1 = scmp.lt.s32.totalorder %s935_s18, 3 }
   0x4   : > { %p189_p2 = pnand %p672_p0, %p188_p1 }
   0x5   : > { %v244_v0 = vld [vmem:[%s1130_s1] sm:$0xff] (!%p189_p2)  ;;  %v245_v1 = vld [vmem:[%s1130_s1 + $0x8] sm:$0xff] (!%p189_p2)  ;;  %v246_v2 = vld [vmem:[%s1130_s1 + $0x10] sm:$0xff] (!%p189_p2)  ;;  %s673_s26 = sshll.u32 (!%p189_p2), %s668_s19, 4 }
   0x6   : > { %192 = sbr.rel (%p189_p2) target bundleno = 502 (0x1f6), region = 40  ;;  %v857_v3 = vpack.c.bf16 (!%p189_p2), %v245_v1, %v244_v0  ;;  %v247_v4 = vld [vmem:[%s1130_s1 + $0x18] sm:$0xff] (!%p189_p2)  ;;  %p217_p3 = scmp.lt.s32.totalorder (!%p189_p2), %s673_s26, 31  ;;  %v248_v6 = vld [vmem:[%s1130_s1 + $0x20] sm:$0xff] (!%p189_p2)  ;;  %v249_v7 = vld [vmem:[%s1130_s1 + $0x28] sm:$0xff] (!%p189_p2) }
   0x7   : > { %v861_v5 = vpack.c.bf16 (!%p189_p2), %v247_v4, %v246_v2  ;;  %v865_v8 = vpack.c.bf16 (!%p189_p2), %v249_v7, %v248_v6  ;;  %v250_v9 = vld [vmem:[%s1130_s1 + $0x30] sm:$0xff] (!%p189_p2)  ;;  %v428_v10 = vld [vmem:[%s1132_s3] sm:$0xff] (!%p189_p2)  ;;  %v429_v11 = vld [vmem:[%s1132_s3 + $0x8] sm:$0xff] (!%p189_p2) }
   0x8   : > { %858 = vmatprep.subr.bf16.mxu0 (!%p189_p2), %v857_v3  ;;  %v251_v12 = vld [vmem:[%s1130_s1 + $0x38] sm:$0xff] (!%p189_p2)  ;;  %v889_v13 = vpack.c.bf16 (!%p189_p2), %v429_v11, %v428_v10  ;;  %v430_v14 = vld [vmem:[%s1132_s3 + $0x10] sm:$0xff] (!%p189_p2)  ;;  %v252_v19 = vld [vmem:[%s1130_s1 + $0x40] sm:$0xff] (!%p189_p2) }
   0x9   : > { %860 = vmatpush3.bf16.msra.mxu0 (!%p189_p2), %v857_v3  ;;  %v431_v15 = vld [vmem:[%s1132_s3 + $0x18] sm:$0xff] (!%p189_p2)  ;;  %v869_v18 = vpack.c.bf16 (!%p189_p2), %v251_v12, %v250_v9  ;;  %v253_v20 = vld [vmem:[%s1130_s1 + $0x48] sm:$0xff] (!%p189_p2)  ;;  %v432_v21 = vld [vmem:[%s1132_s3 + $0x20] sm:$0xff] (!%p189_p2) }
   0xa   : > { %862 = vmatprep.subr.bf16.mxu0 (!%p189_p2), %v861_v5  ;;  %v893_v17 = vpack.c.bf16 (!%p189_p2), %v431_v15, %v430_v14  ;;  %890 = vmatprep.subr.bf16.mxu1 (!%p189_p2), %v889_v13  ;;  %v433_v22 = vld [vmem:[%s1132_s3 + $0x28] sm:$0xff] (!%p189_p2)  ;;  %v434_v23 = vld [vmem:[%s1132_s3 + $0x30] sm:$0xff] (!%p189_p2)  ;;  %v873_v24 = vpack.c.bf16 (!%p189_p2), %v253_v20, %v252_v19  ;;  %v435_v26 = vld [vmem:[%s1132_s3 + $0x38] sm:$0xff] (!%p189_p2) }
   0xb   : > { %892 = vmatpush3.bf16.msra.mxu1 (!%p189_p2), %v889_v13  ;;  %v897_v25 = vpack.c.bf16 (!%p189_p2), %v433_v22, %v432_v21  ;;  %v254_v27 = vld [vmem:[%s1130_s1 + $0x50] sm:$0xff] (!%p189_p2)  ;;  %v255_v28 = vld [vmem:[%s1130_s1 + $0x58] sm:$0xff] (!%p189_p2)  ;;  %v901_v29 = vpack.c.bf16 (!%p189_p2), %v435_v26, %v434_v23  ;;  %v436_v30 = vld [vmem:[%s1132_s3 + $0x40] sm:$0xff] (!%p189_p2) }
   0xc   : > { %894 = vmatprep.subr.bf16.mxu1 (!%p189_p2), %v893_v17  ;;  %v437_v31 = vld [vmem:[%s1132_s3 + $0x48] sm:$0xff] (!%p189_p2)  ;;  %v877_v32 = vpack.c.bf16 (!%p189_p2), %v255_v28, %v254_v27  ;;  %v256_v33 = vld [vmem:[%s1130_s1 + $0x60] sm:$0xff] (!%p189_p2)  ;;  %v438_v36 = vld [vmem:[%s1132_s3 + $0x50] sm:$0xff] (!%p189_p2) }
   0xd   : > { %s1136_s26 = smov (!%p217_p3, %s673_s26), 31  ;;  %864 = vmatpush3.bf16.msra.mxu0 %v861_v5  ;;  %v257_v34 = vld [vmem:[%s1130_s1 + $0x68] sm:$0xff]  ;;  %v905_v35 = vpack.c.bf16 %v437_v31, %v436_v30  ;;  %v439_v37 = vld [vmem:[%s1132_s3 + $0x58] sm:$0xff]  ;;  %v258_v39 = vld [vmem:[%s1130_s1 + $0x70] sm:$0xff] }
   0xe   : > { %s674_s10 = sshll.u32 %s1136_s26, 3  ;;  %866 = vmatprep.subr.bf16.mxu0 %v865_v8  ;;  %v881_v38 = vpack.c.bf16 %v257_v34, %v256_v33  ;;  %v259_v40 = vld [vmem:[%s1130_s1 + $0x78] sm:$0xff]  ;;  %v909_v41 = vpack.c.bf16 %v439_v37, %v438_v36  ;;  %v440_v42 = vld [vmem:[%s1132_s3 + $0x60] sm:$0xff]  ;;  %v441_v43 = vld [vmem:[%s1132_s3 + $0x68] sm:$0xff] }
   0xf   : > { %s1013_s20 = scalar_lea.vmem %s1129_s0, %s674_s10  ;;  %896 = vmatpush3.bf16.msra.mxu1 %v893_v17  ;;  %v885_v44 = vpack.c.bf16 %v259_v40, %v258_v39  ;;  %v913_v45 = vpack.c.bf16 %v441_v43, %v440_v42  ;;  %v442_v61 = vld [vmem:[%s1132_s3 + $0x70] sm:$0xff]  ;;  %v443_v62 = vld [vmem:[%s1132_s3 + $0x78] sm:$0xff]  ;;  %v677_v0 = vld [vmem:[%s1131_s2] ss:$0 sm:$0xff]  ;;  %s1108_s29 = scalar_lea.vmem %s1134_s5, %s674_s10 }
  0x10   : > { %v228_v16 = vld [vmem:[%s1013_s20] sm:$0xff]  ;;  %898 = vmatprep.subr.bf16.mxu1 %v897_v25  ;;  %v229_v46 = vld [vmem:[%s1013_s20 + $0x8] sm:$0xff]  ;;  %v230_v47 = vld [vmem:[%s1013_s20 + $0x10] sm:$0xff]  ;;  %v917_v63 = vpack.c.bf16 %v443_v62, %v442_v61 }
  0x11   : > { %777 = vmatprep.mubr.f32.mxu0 %v228_v16  ;;  %868 = vmatpush3.bf16.msra.mxu0 %v865_v8  ;;  %v231_v48 = vld [vmem:[%s1013_s20 + $0x18] sm:$0xff]  ;;  %v232_v49 = vld [vmem:[%s1013_s20 + $0x20] sm:$0xff]  ;;  %v233_v50 = vld [vmem:[%s1013_s20 + $0x28] sm:$0xff] }
  0x12   : > { %870 = vmatprep.subr.bf16.mxu0 %v869_v18  ;;  %v234_v51 = vld [vmem:[%s1013_s20 + $0x30] sm:$0xff]  ;;  %v235_v52 = vld [vmem:[%s1013_s20 + $0x38] sm:$0xff]  ;;  %v236_v53 = vld [vmem:[%s1013_s20 + $0x40] sm:$0xff] }
  0x13   : > { %900 = vmatpush3.bf16.msra.mxu1 %v897_v25  ;;  %v237_v54 = vld [vmem:[%s1013_s20 + $0x48] sm:$0xff]  ;;  %v238_v55 = vld [vmem:[%s1013_s20 + $0x50] sm:$0xff]  ;;  %v239_v56 = vld [vmem:[%s1013_s20 + $0x58] sm:$0xff] }
  0x14   : > { %902 = vmatprep.subr.bf16.mxu1 %v901_v29  ;;  %v240_v57 = vld [vmem:[%s1013_s20 + $0x60] sm:$0xff]  ;;  %v241_v58 = vld [vmem:[%s1013_s20 + $0x68] sm:$0xff]  ;;  %v242_v59 = vld [vmem:[%s1013_s20 + $0x70] sm:$0xff] }
  0x15   : > { %872 = vmatpush3.bf16.msra.mxu0 %v869_v18  ;;  %v243_v60 = vld [vmem:[%s1013_s20 + $0x78] sm:$0xff] }
  0x16   : > { %874 = vmatprep.subr.bf16.mxu0 %v873_v24 }
  0x17   : > { %904 = vmatpush3.bf16.msra.mxu1 %v901_v29 }
  0x18   : > { %906 = vmatprep.subr.bf16.mxu1 %v905_v35 }
  0x19   : > { %876 = vmatpush3.bf16.msra.mxu0 %v873_v24 }
  0x1a   : > { %878 = vmatprep.subr.bf16.mxu0 %v877_v32 }
  0x1b   : > { %908 = vmatpush3.bf16.msra.mxu1 %v905_v35 }
  0x1c   : > { %910 = vmatprep.subr.bf16.mxu1 %v909_v41 }
  0x1d   : > { %880 = vmatpush3.bf16.msra.mxu0 %v877_v32 }
  0x1e   : > { %882 = vmatprep.subr.bf16.mxu0 %v881_v38 }
  0x1f   : > { %912 = vmatpush3.bf16.msra.mxu1 %v909_v41 }
  0x20   : > { %914 = vmatprep.subr.bf16.mxu1 %v913_v45 }
  0x21   : > { %884 = vmatpush3.bf16.msra.mxu0 %v881_v38 }
  0x22   : > { %886 = vmatprep.subr.bf16.mxu0 %v885_v44 }
  0x23   : > { %916 = vmatpush3.bf16.msra.mxu1 %v913_v45 }
  0x24   : > { %918 = vmatprep.subr.bf16.mxu1 %v917_v63 }
  0x25   : > { %888 = vmatpush3.bf16.msra.mxu0 %v885_v44 }
  0x27   : > { %920 = vmatpush3.bf16.msra.mxu1 %v917_v63 }
  0x28   : > { %778 = vmatmul.mubr.f32.vlgmr.msra.gmra.mrb[0].mxu0 %v229_v46 }
  0x29   : > { %780 = vmatprep.mubr.f32.mxu0 %v230_v47 }
  0x2c   : > { %781 = vmatmul.mubr.f32.gmra.mrb[2].mxu0 %v231_v48 }
  0x2d   : > { %783 = vmatprep.mubr.f32.mxu0 %v232_v49  ;;  %v678_v49 = vld [vmem:[%s1133_s4] ss:$0 sm:$0xff] }
  0x30   : > { %784 = vmatmul.mubr.f32.gmra.mrb[4].mxu0 %v233_v50 }
  0x31   : > { %786 = vmatprep.mubr.f32.mxu0 %v234_v51 }
  0x34   : > { %787 = vmatmul.mubr.f32.gmra.mrb[6].mxu0 %v235_v52 }
  0x35   : > { %789 = vmatprep.mubr.f32.mxu0 %v236_v53 }
  0x38   : > { %790 = vmatmul.mubr.f32.gmra.mrb[8].mxu0 %v237_v54 }
  0x39   : > { %792 = vmatprep.mubr.f32.mxu0 %v238_v55 }
  0x3c   : > { %793 = vmatmul.mubr.f32.gmra.mrb[10].mxu0 %v239_v56 }
  0x3d   : > { %795 = vmatprep.mubr.f32.mxu0 %v240_v57 }
  0x40   : > { %796 = vmatmul.mubr.f32.gmra.mrb[12].mxu0 %v241_v58 }
  0x41   : > { %798 = vmatprep.mubr.f32.mxu0 %v242_v59 }
  0x44   : > { %799 = vmatmul.mubr.f32.gmra.mrb[14].mxu0 %v243_v60 }
  0xfb   : > { %v779_v1 = vpop.f32.mrb[0].mxu0 }
  0xfc   : > { %v339_v2 = vadd.f32 %v779_v1, %v677_v0  ;;  %v333_v3 = vpop.f32.mrb[1].mxu0 }
  0xfd   : > { %v334_v4 = vadd.f32 %v677_v0, %v333_v3 }
  0xfe   : > { %v413_v7 = vmax.f32 %v339_v2, 0.0 }
  0xff   : > { %v782_v5 = vpop.f32.mrb[2].mxu0  ;;  %v412_v6 = vmax.f32 %v334_v4, 0.0 }
 0x100   : > { %v349_v8 = vadd.f32 %v782_v5, %v677_v0  ;;  %v343_v9 = vpop.f32.mrb[3].mxu0 }
 0x101   : > { %v344_v10 = vadd.f32 %v677_v0, %v343_v9  ;;  %833 = vmatprep.mubr.f32.mxu1 %v412_v6 }
 0x102   : > { %834 = vmatmul.mubr.f32.vlgmr.msra.gmra.mrb[0].mxu1 %v413_v7  ;;  %v415_v13 = vmax.f32 %v349_v8, 0.0 }
 0x103   : > { %v414_v11 = vmax.f32 %v344_v10, 0.0  ;;  %v785_v12 = vpop.f32.mrb[4].mxu0 }
 0x104   : > { %v359_v14 = vadd.f32 %v785_v12, %v677_v0  ;;  %v353_v15 = vpop.f32.mrb[5].mxu0 }
 0x105   : > { %v354_v16 = vadd.f32 %v677_v0, %v353_v15  ;;  %836 = vmatprep.mubr.f32.mxu1 %v414_v11 }
 0x106   : > { %837 = vmatmul.mubr.f32.gmra.mrb[2].mxu1 %v415_v13  ;;  %v417_v19 = vmax.f32 %v359_v14, 0.0 }
 0x107   : > { %v416_v17 = vmax.f32 %v354_v16, 0.0  ;;  %v788_v18 = vpop.f32.mrb[6].mxu0 }
 0x108   : > { %v369_v20 = vadd.f32 %v788_v18, %v677_v0  ;;  %v363_v21 = vpop.f32.mrb[7].mxu0 }
 0x109   : > { %v364_v22 = vadd.f32 %v677_v0, %v363_v21  ;;  %839 = vmatprep.mubr.f32.mxu1 %v416_v17 }
 0x10a   : > { %840 = vmatmul.mubr.f32.gmra.mrb[4].mxu1 %v417_v19  ;;  %v419_v25 = vmax.f32 %v369_v20, 0.0 }
 0x10b   : > { %v418_v23 = vmax.f32 %v364_v22, 0.0  ;;  %v791_v24 = vpop.f32.mrb[8].mxu0 }
 0x10c   : > { %v379_v26 = vadd.f32 %v791_v24, %v677_v0  ;;  %v373_v27 = vpop.f32.mrb[9].mxu0 }
 0x10d   : > { %v374_v28 = vadd.f32 %v677_v0, %v373_v27  ;;  %842 = vmatprep.mubr.f32.mxu1 %v418_v23 }
 0x10e   : > { %843 = vmatmul.mubr.f32.gmra.mrb[6].mxu1 %v419_v25  ;;  %v421_v31 = vmax.f32 %v379_v26, 0.0 }
 0x10f   : > { %v420_v29 = vmax.f32 %v374_v28, 0.0  ;;  %v794_v30 = vpop.f32.mrb[10].mxu0 }
 0x110   : > { %v389_v32 = vadd.f32 %v794_v30, %v677_v0  ;;  %v383_v33 = vpop.f32.mrb[11].mxu0 }
 0x111   : > { %v384_v34 = vadd.f32 %v677_v0, %v383_v33  ;;  %845 = vmatprep.mubr.f32.mxu1 %v420_v29 }
 0x112   : > { %846 = vmatmul.mubr.f32.gmra.mrb[8].mxu1 %v421_v31  ;;  %v423_v37 = vmax.f32 %v389_v32, 0.0 }
 0x113   : > { %v422_v35 = vmax.f32 %v384_v34, 0.0  ;;  %v797_v36 = vpop.f32.mrb[12].mxu0 }
 0x114   : > { %v399_v38 = vadd.f32 %v797_v36, %v677_v0  ;;  %v393_v39 = vpop.f32.mrb[13].mxu0 }
 0x115   : > { %v394_v40 = vadd.f32 %v677_v0, %v393_v39  ;;  %848 = vmatprep.mubr.f32.mxu1 %v422_v35 }
 0x116   : > { %849 = vmatmul.mubr.f32.gmra.mrb[10].mxu1 %v423_v37  ;;  %v425_v43 = vmax.f32 %v399_v38, 0.0 }
 0x117   : > { %v424_v41 = vmax.f32 %v394_v40, 0.0  ;;  %v800_v42 = vpop.f32.mrb[14].mxu0 }
 0x118   : > { %v409_v44 = vadd.f32 %v800_v42, %v677_v0  ;;  %v403_v45 = vpop.f32.mrb[15].mxu0 }
 0x119   : > { %v404_v46 = vadd.f32 %v677_v0, %v403_v45  ;;  %851 = vmatprep.mubr.f32.mxu1 %v424_v41 }
 0x11a   : > { %852 = vmatmul.mubr.f32.gmra.mrb[12].mxu1 %v425_v43  ;;  %v427_v48 = vmax.f32 %v409_v44, 0.0 }
 0x11b   : > { %v426_v47 = vmax.f32 %v404_v46, 0.0 }
 0x11d   : > { %854 = vmatprep.mubr.f32.mxu1 %v426_v47 }
 0x11e   : > { %855 = vmatmul.mubr.f32.gmra.mrb[14].mxu1 %v427_v48 }
 0x1d5   : > { %v835_v50 = vpop.f32.mrb[0].mxu1 }
 0x1d6   : > { %v523_v51 = vadd.f32 %v835_v50, %v678_v49  ;;  %v517_v52 = vpop.f32.mrb[1].mxu1 }
 0x1d7   : > { %v518_v53 = vadd.f32 %v678_v49, %v517_v52 }
 0x1d8   : > { %597 = vst [vmem:[%s1108_s29 + $0x8] sm:$0xff] %v523_v51 }
 0x1d9   : > { %596 = vst [vmem:[%s1108_s29] sm:$0xff] %v518_v53  ;;  %v838_v54 = vpop.f32.mrb[2].mxu1 }
 0x1da   : > { %v533_v55 = vadd.f32 %v838_v54, %v678_v49  ;;  %v527_v56 = vpop.f32.mrb[3].mxu1 }
 0x1db   : > { %v528_v57 = vadd.f32 %v678_v49, %v527_v56 }
 0x1dc   : > { %599 = vst [vmem:[%s1108_s29 + $0x18] sm:$0xff] %v533_v55 }
 0x1dd   : > { %598 = vst [vmem:[%s1108_s29 + $0x10] sm:$0xff] %v528_v57  ;;  %v841_v58 = vpop.f32.mrb[4].mxu1 }
 0x1de   : > { %v543_v59 = vadd.f32 %v841_v58, %v678_v49  ;;  %v537_v60 = vpop.f32.mrb[5].mxu1 }
 0x1df   : > { %v538_v61 = vadd.f32 %v678_v49, %v537_v60 }
 0x1e0   : > { %601 = vst [vmem:[%s1108_s29 + $0x28] sm:$0xff] %v543_v59 }
 0x1e1   : > { %600 = vst [vmem:[%s1108_s29 + $0x20] sm:$0xff] %v538_v61  ;;  %v844_v62 = vpop.f32.mrb[6].mxu1 }
 0x1e2   : > { %v553_v63 = vadd.f32 %v844_v62, %v678_v49  ;;  %v547_v0 = vpop.f32.mrb[7].mxu1 }
 0x1e3   : > { %v548_v1 = vadd.f32 %v678_v49, %v547_v0 }
 0x1e4   : > { %603 = vst [vmem:[%s1108_s29 + $0x38] sm:$0xff] %v553_v63 }
 0x1e5   : > { %602 = vst [vmem:[%s1108_s29 + $0x30] sm:$0xff] %v548_v1  ;;  %v847_v2 = vpop.f32.mrb[8].mxu1 }
 0x1e6   : > { %v563_v3 = vadd.f32 %v847_v2, %v678_v49  ;;  %v557_v4 = vpop.f32.mrb[9].mxu1 }
 0x1e7   : > { %v558_v5 = vadd.f32 %v678_v49, %v557_v4 }
 0x1e8   : > { %605 = vst [vmem:[%s1108_s29 + $0x48] sm:$0xff] %v563_v3 }
 0x1e9   : > { %604 = vst [vmem:[%s1108_s29 + $0x40] sm:$0xff] %v558_v5  ;;  %v850_v6 = vpop.f32.mrb[10].mxu1 }
 0x1ea   : > { %v573_v7 = vadd.f32 %v850_v6, %v678_v49  ;;  %v567_v8 = vpop.f32.mrb[11].mxu1 }
 0x1eb   : > { %v568_v9 = vadd.f32 %v678_v49, %v567_v8 }
 0x1ec   : > { %607 = vst [vmem:[%s1108_s29 + $0x58] sm:$0xff] %v573_v7 }
 0x1ed   : > { %606 = vst [vmem:[%s1108_s29 + $0x50] sm:$0xff] %v568_v9  ;;  %v853_v10 = vpop.f32.mrb[12].mxu1 }
 0x1ee   : > { %v583_v11 = vadd.f32 %v853_v10, %v678_v49  ;;  %v577_v12 = vpop.f32.mrb[13].mxu1 }
 0x1ef   : > { %v578_v13 = vadd.f32 %v678_v49, %v577_v12 }
 0x1f0   : > { %609 = vst [vmem:[%s1108_s29 + $0x68] sm:$0xff] %v583_v11 }
 0x1f1   : > { %608 = vst [vmem:[%s1108_s29 + $0x60] sm:$0xff] %v578_v13  ;;  %v856_v14 = vpop.f32.mrb[14].mxu1 }
 0x1f2   : > { %v593_v15 = vadd.f32 %v856_v14, %v678_v49  ;;  %v587_v16 = vpop.f32.mrb[15].mxu1 }
 0x1f3   : > { %v588_v17 = vadd.f32 %v678_v49, %v587_v16 }
 0x1f4   : > { %611 = vst [vmem:[%s1108_s29 + $0x78] sm:$0xff] %v593_v15 }
 0x1f5   : > { %610 = vst [vmem:[%s1108_s29 + $0x70] sm:$0xff] %v588_v17 }
 0x1f6 PF: > { %s15_s18 = sadd.s32 1, %s935_s18  }
 0x1f7   : > { %p12_p4 = scmp.ge.s32.totalorder %s15_s18, 4  }
 0x1f9   :  { %14 = sbr.rel (!%p12_p4) target bundleno = 1 (0x1), region = 70 }

</bundles_post_ra>
